<compile_context>
chip_gen: v6e
topology: v6e:2x2x1
jax: 0.10.0
libtpu: 0.0.40
codegen_flags: <defaults>
</compile_context>

<pallas_src>
import jax
import jax.numpy as jnp
from jax.experimental import pallas as pl
from jax.experimental.pallas import tpu as pltpu


_LANES = 512               # lane-dense, wide rows -> full unmasked vector stores
_TARGET_BLOCK_ROWS = 512   # 512 x 512 x 4B = 1 MiB per block buffer
                           # (1 in + 1 out, double-buffered ≈ 4 MiB VMEM resident)


def _relu_kernel(x_ref, o_ref):
    # Single elementwise hot path over the interleaved real/imag f32 slab.
    o_ref[...] = jnp.maximum(x_ref[...], 0.0)


def independent_real_imag_relu(z: jax.Array) -> jax.Array:
    """Apply ReLU independently to real and imaginary parts of complex input z."""
    orig_shape = z.shape

    # Interleave real/imag into one float32 array (one fused XLA pass).
    zf = jnp.stack([jnp.real(z), jnp.imag(z)], axis=-1).astype(jnp.float32)
    total = zf.size

    # Flatten into a lane-dense (rows, _LANES) slab; pad rows up to a multiple
    # of the block size so the grid divides evenly (no pathological 8-row tiles).
    rows_needed = pl.cdiv(total, _LANES)
    if rows_needed >= _TARGET_BLOCK_ROWS:
        block_rows = _TARGET_BLOCK_ROWS
    else:
        block_rows = -(-rows_needed // 8) * 8  # round up to sublane multiple
    pad_rows = -(-rows_needed // block_rows) * block_rows
    padded = pad_rows * _LANES

    flat = jnp.pad(zf.reshape(-1), (0, padded - total))  # zero pad: relu(0) = 0
    slab = flat.reshape(pad_rows, _LANES)

    grid = (pad_rows // block_rows,)
    spec = pl.BlockSpec((block_rows, _LANES), lambda i: (i, 0))

    out_slab = pl.pallas_call(
        _relu_kernel,
        grid=grid,
        in_specs=[spec],
        out_specs=spec,
        out_shape=jax.ShapeDtypeStruct((pad_rows, _LANES), jnp.float32),
        compiler_params=pltpu.CompilerParams(
            dimension_semantics=("parallel",),      # v7x: shard grid across 2 TCs
            vmem_limit_bytes=32 * 1024 * 1024,      # v5e default scoped limit is 16 MiB
        ),
    )(slab)

    # Drop padding and recombine into complex64 (single fused XLA pass).
    out_f = out_slab.reshape(-1)[:total].reshape(orig_shape + (2,))
    return jax.lax.complex(out_f[..., 0], out_f[..., 1])


if __name__ == "__main__":
    key = jax.random.PRNGKey(0)
    kr, ki = jax.random.split(key)

    # Small NCHW complex input, consistent with the PyTorch module's usage.
    N, C, H, W = 2, 4, 16, 16
    zr = jax.random.normal(kr, (N, C, H, W), dtype=jnp.float32)
    zi = jax.random.normal(ki, (N, C, H, W), dtype=jnp.float32)
    z = jax.lax.complex(zr, zi)

    out = independent_real_imag_relu(z)
    out = jax.block_until_ready(out)

    # Reference check in plain JAX.
    ref = jax.lax.complex(jnp.maximum(zr, 0.0), jnp.maximum(zi, 0.0))
    assert out.shape == z.shape and out.dtype == jnp.complex64
    assert jnp.allclose(out, ref), "mismatch vs reference"

    print("KERNEL_OK")
</pallas_src>

<mosaic_0001>
module attributes {stable_mosaic.version = 11 : i64} {
  func.func @_relu_kernel(%arg0: i32, %arg1: memref<8x512xf32, #tpu.memory_space<vmem>>, %arg2: memref<8x512xf32, #tpu.memory_space<vmem>>) attributes {dimension_semantics = [#tpu.dimension_semantics<parallel>], iteration_bounds = array<i64: 1>, scalar_prefetch = 0 : i64, scratch_operands = 0 : i64, tpu.core_type = #tpu.core_type<tc>, window_params = [{transform_indices = @transform_0, window_bounds = array<i64: 8, 512>}, {transform_indices = @transform_1, window_bounds = array<i64: 8, 512>}]} {
    %c0 = arith.constant 0 : index
    %c0_0 = arith.constant 0 : index
    %0 = vector.load %arg1[%c0, %c0_0] : memref<8x512xf32, #tpu.memory_space<vmem>>, vector<8x512xf32>
    %cst = arith.constant 0.000000e+00 : f32
    %1 = vector.broadcast %cst : f32 to vector<8x512xf32>
    %2 = arith.maximumf %0, %1 : vector<8x512xf32>
    %c0_1 = arith.constant 0 : index
    %c0_2 = arith.constant 0 : index
    %3 = vector.load %arg2[%c0_1, %c0_2] : memref<8x512xf32, #tpu.memory_space<vmem>>, vector<8x512xf32>
    tpu.vector_store %arg2[%c0_1, %c0_2], %2 {strides = array<i32>} : memref<8x512xf32, #tpu.memory_space<vmem>>, vector<8x512xf32>,
    return
  }
  func.func @transform_0(%arg0: i32) -> (i32, i32) {
    %c0_i32 = arith.constant 0 : i32
    %c0_i32_0 = arith.constant 0 : i32
    return %arg0, %c0_i32 : i32, i32
  }
  func.func @transform_1(%arg0: i32) -> (i32, i32) {
    %c0_i32 = arith.constant 0 : i32
    %c0_i32_0 = arith.constant 0 : i32
    return %arg0, %c0_i32 : i32, i32
  }
}

</mosaic_0001>

<bundles_post_ra>
// kernel: tpu_custom_call.1
= control target key start
LH: loop header
LB: loop body
LE: loop exit
PB: predicated region body
PF: predicated region fallthrough
CT: control target
= control target key end

     0   :  { %6 = vsyncpa [#allocation3], 0  ;;  %s112_s0 = inlined_call_operand.hbm [shape: f32[8,512], index: 0, kind: input, shape index: {}]   ;;  %s113_s1 = inlined_call_operand.hbm [shape: f32[8,512], index: 1, kind: output, shape index: {}]  }
   0x1   :  { %7 = vsyncpa [#allocation4], 0  ;;  %s94_s6 = smov [#allocation2]  }
   0x2   :  { %s14_s7 = sshll.u32 %s94_s6, 4  ;;  %s15_s7 = int_to_ptr.vmem [resolvable:$true] %s14_s7 }
   0x3   :  { %s58_s8 = scalar_lea.vmem %s15_s7, 512  ;;  %p63_p1 = scmp.lt.s32.totalorder %s15_s7, %s15_s7 }
   0x4   :  { %p59_p0 = scmp.ne.s32.totalorder %s15_s7, %s58_s8  ;;  %p64_p2 = scmp.lt.s32.totalorder %s58_s8, %s58_s8 }
   0x6   :  { %p65_p3 = por %p64_p2, %p63_p1 }
   0x8   :  { %p66_p4 = pnand %p65_p3, %p59_p0 }
   0xa   :  { %69 = shalt.err (!%p66_p4)
}
   0xb   :  { %17 = dma.hbm_to_vmem [thread:$0]  %s112_s0, 512, %s15_s7, [#allocation3]  }
   0xc   :  { %90 = dma.done.wait [#allocation3], 512  }
   0xd   :  { %91 = vsyncadd [#allocation3], 4294966784  ;;  %s95_s11 = smov [#allocation5]   ;;  %v21_v0 = vld [vmem:[#allocation2] sm:$0xff]  ;;  %v22_v1 = vld [vmem:[#allocation2 + $0x8] sm:$0xff] }
   0xe   :  { %s39_s12 = sshll.u32 %s95_s11, 4  ;;  %v23_v2 = vld [vmem:[#allocation2 + $0x10] sm:$0xff]  ;;  %v25_v3 = vmax.f32 %v21_v0, 0.0  ;;  %v26_v4 = vmax.f32 %v22_v1, 0.0  ;;  %v24_v6 = vld [vmem:[#allocation2 + $0x18] sm:$0xff]  ;;  %s40_s12 = int_to_ptr.vmem [resolvable:$true] %s39_s12 }
   0xf   :  { %v27_v5 = vmax.f32 %v23_v2, 0.0  ;;  %v28_v7 = vmax.f32 %v24_v6, 0.0  ;;  %s70_s13 = scalar_lea.vmem %s40_s12, 512  ;;  %p75_p6 = scmp.lt.s32.totalorder %s40_s12, %s40_s12 }
  0x10   :  { %29 = vst [vmem:[#allocation5] sm:$0xff] %v25_v3  ;;  %30 = vst [vmem:[#allocation5 + $0x8] sm:$0xff] %v26_v4  ;;  %p71_p5 = scmp.ne.s32.totalorder %s40_s12, %s70_s13  ;;  %p76_p7 = scmp.lt.s32.totalorder %s70_s13, %s70_s13 }
  0x11   :  { %31 = vst [vmem:[#allocation5 + $0x10] sm:$0xff] %v27_v5  ;;  %32 = vst [vmem:[#allocation5 + $0x18] sm:$0xff] %v28_v7 }
  0x12   :  { %p77_p8 = por %p76_p7, %p75_p6 }
  0x14   :  { %p78_p9 = pnand %p77_p8, %p71_p5 }
  0x16   :  { %81 = shalt.err (!%p78_p9)
}
  0x17   :  { %42 = dma.vmem_to_hbm [thread:$0]  %s40_s12, 512, %s113_s1, [#allocation4]  }
  0x18   :  { %92 = dma.done.wait [#allocation4], 512  }
  0x19   :  { %93 = vsyncadd [#allocation4], 4294966784 }
  0x1a   :  { %46 = vsyncpa [#allocation3], 1 }
  0x1b   :  { %47 = vsyncpa [#allocation4], 1 }

</bundles_post_ra>
